<compile_context>
chip_gen: v7x
topology: tpu7x:2x2x1
jax: 0.10.0
libtpu: 0.0.40
codegen_flags: <defaults>
</compile_context>

<pallas_src>
import jax
import jax.numpy as jnp
from jax.experimental import pallas as pl
from jax.experimental.pallas import tpu as pltpu


def _round_up(n: int, m: int) -> int:
    return ((n + m - 1) // m) * m


def qnet_kernel(x_ref, w1_ref, b1_ref, w2_ref, b2_ref, w3_ref, b3_ref, o_ref):
    wdt = w1_ref.dtype  # compute dtype of the weights (f32 or bf16)
    # Layer 1: Linear + ReLU. MXU accumulates in f32 (preferred_element_type);
    # bias-add / ReLU stay in f32 (v5e has no bf16 VPU; free on v6e/v7x).
    h = jnp.dot(x_ref[...], w1_ref[...], preferred_element_type=jnp.float32)
    h = jnp.maximum(h + b1_ref[...], 0.0)
    # Layer 2: Linear + ReLU (cast activations back to the weight dtype for the MXU).
    h = jnp.dot(h.astype(wdt), w2_ref[...], preferred_element_type=jnp.float32)
    h = jnp.maximum(h + b2_ref[...], 0.0)
    # Layer 3: Linear (no activation).
    h = jnp.dot(h.astype(wdt), w3_ref[...], preferred_element_type=jnp.float32)
    o_ref[...] = (h + b3_ref[...]).astype(o_ref.dtype)


def prepare_qnet_params(params, *, compute_dtype=jnp.float32):
    """Pad/cast the weights ONCE (call after each weight update, never per step).

    Hidden dims are padded to 128 lanes (lane-dense inner matmuls), the output dim
    only to 8, the input dim is left at its true width S. Zero padding is exact for
    matmul + bias + ReLU. Biases stay f32 (f32 epilogues in the kernel).
    """
    w1, w2, w3 = params["w1"], params["w2"], params["w3"]
    b1 = jnp.asarray(params["b1"]).reshape(1, -1)
    b2 = jnp.asarray(params["b2"]).reshape(1, -1)
    b3 = jnp.asarray(params["b3"]).reshape(1, -1)

    S, H1 = w1.shape
    H2 = w2.shape[1]
    A = w3.shape[1]
    H1_p = _round_up(H1, 128)
    H2_p = _round_up(H2, 128)
    A_p = _round_up(A, 8)  # narrow output: masked stores, far fewer HBM writeback bytes

    cdt, f32 = compute_dtype, jnp.float32
    w1p = jnp.zeros((S, H1_p), cdt).at[:, :H1].set(w1.astype(cdt))
    b1p = jnp.zeros((1, H1_p), f32).at[:, :H1].set(b1.astype(f32))
    w2p = jnp.zeros((H1_p, H2_p), cdt).at[:H1, :H2].set(w2.astype(cdt))
    b2p = jnp.zeros((1, H2_p), f32).at[:, :H2].set(b2.astype(f32))
    w3p = jnp.zeros((H2_p, A_p), cdt).at[:H2, :A].set(w3.astype(cdt))
    b3p = jnp.zeros((1, A_p), f32).at[:, :A].set(b3.astype(f32))

    return {"w1": w1p, "b1": b1p, "w2": w2p, "b2": b2p, "w3": w3p, "b3": b3p,
            "dims": (S, H1, H2, A), "compute_dtype": cdt}


def qnet_forward(x, prepared, *, batch_tile=1024):
    """x: [B, state_dim]. prepared: output of prepare_qnet_params."""
    w1p, b1p = prepared["w1"], prepared["b1"]
    w2p, b2p = prepared["w2"], prepared["b2"]
    w3p, b3p = prepared["w3"], prepared["b3"]
    S, H1, H2, A = prepared["dims"]
    cdt = prepared["compute_dtype"]
    A_p = w3p.shape[1]

    B = x.shape[0]
    assert x.shape[1] == S, f"expected state_dim={S}, got {x.shape[1]}"

    # Sublane multiple: bf16 packs 2 rows/sublane -> 16; f32 -> 8.
    sub = 16 if cdt == jnp.bfloat16 else 8
    # Split the batch into >= 2 tiles when possible so the "parallel" axis can shard
    # across both TensorCores on v7x; cap each tile at batch_tile rows (512-1024 hits
    # ~85% of HBM roofline per step; per-step overhead ~0.35us).
    TB = min(_round_up(batch_tile, sub), _round_up(pl.cdiv(B, 2), sub))
    TB = max(TB, sub)
    B_p = _round_up(B, TB)
    # VMEM budget (re-derive against 64 MiB if this grows on v7x):
    #   2 * TB * (S + A_p) * 4B double-buffered activations/outputs
    # + 2 * (S*H1_p + H1_p*H2_p + H2_p*A_p) * itemsize resident weights  (~2 MiB here).

    xc = x.astype(cdt)
    xp = xc if B_p == B else jnp.zeros((B_p, S), cdt).at[:B].set(xc)

    grid = (B_p // TB,)

    def resident(shape):
        # Constant index_map -> block never changes -> stays VMEM-resident across the
        # batch grid. (pipeline_mode=pl.Buffered(1) would drop the redundant second
        # buffer, ~0.4 MiB; left at the default for maximum compile portability.)
        return pl.BlockSpec(shape, lambda i: (0,) * len(shape))

    out = pl.pallas_call(
        qnet_kernel,
        out_shape=jax.ShapeDtypeStruct((B_p, A_p), jnp.float32),
        grid=grid,
        in_specs=[
            # Activations: streamed/tiled over batch at the TRUE feature width S
            # (no 32x read amplification); Pallas double-buffers the tiles.
            pl.BlockSpec((TB, S), lambda i: (i, 0)),
            resident(w1p.shape), resident(b1p.shape),
            resident(w2p.shape), resident(b2p.shape),
            resident(w3p.shape), resident(b3p.shape),
        ],
        out_specs=pl.BlockSpec((TB, A_p), lambda i: (i, 0)),
        compiler_params=pltpu.CompilerParams(
            dimension_semantics=("parallel",),  # megacore sharding of batch on v7x
        ),
    )(xp, w1p, b1p, w2p, b2p, w3p, b3p)

    if B_p != B or A_p != A:
        out = out[:B, :A]
    return out


def init_qnet_params(key, state_dim, hidden_dim, action_dim):
    """Deterministic init mimicking torch.nn.Linear default (U(-1/sqrt(fan_in), +))."""
    def linear(key, fan_in, fan_out):
        kw, kb = jax.random.split(key)
        bound = 1.0 / jnp.sqrt(fan_in)
        w = jax.random.uniform(kw, (fan_in, fan_out), jnp.float32, -bound, bound)
        b = jax.random.uniform(kb, (1, fan_out), jnp.float32, -bound, bound)
        return w, b

    k1, k2, k3 = jax.random.split(key, 3)
    w1, b1 = linear(k1, state_dim, 64)
    w2, b2 = linear(k2, 64, hidden_dim)
    w3, b3 = linear(k3, hidden_dim, action_dim)
    return {"w1": w1, "b1": b1, "w2": w2, "b2": b2, "w3": w3, "b3": b3}


def qnet_reference(x, params):
    h1 = jnp.maximum(x @ params["w1"] + params["b1"], 0.0)
    h2 = jnp.maximum(h1 @ params["w2"] + params["b2"], 0.0)
    return h2 @ params["w3"] + params["b3"]


if __name__ == "__main__":
    key = jax.random.PRNGKey(0)
    k_params, k_x1, k_x2 = jax.random.split(key, 3)

    state_dim, hidden_dim, action_dim = 4, 32, 2
    raw_params = init_qnet_params(k_params, state_dim, hidden_dim, action_dim)

    # Padding / casting happens exactly once here (not per forward call).
    prepped = prepare_qnet_params(raw_params, compute_dtype=jnp.float32)
    fwd = jax.jit(lambda xx: qnet_forward(xx, prepped))

    # Small case (matches the toy spec): single grid step.
    batch = 2
    x_small = jax.random.normal(k_x1, (batch, state_dim), jnp.float32)
    out_small = jax.block_until_ready(fwd(x_small))
    ref_small = qnet_reference(x_small, raw_params)
    assert out_small.shape == (batch, action_dim)
    assert jnp.allclose(out_small, ref_small, atol=1e-5, rtol=1e-5)

    # Larger batch: >= 2 pipelined batch tiles (and megacore-shardable on v7x).
    big_batch = 300
    x_big = jax.random.normal(k_x2, (big_batch, state_dim), jnp.float32)
    out_big = jax.block_until_ready(fwd(x_big))
    ref_big = qnet_reference(x_big, raw_params)
    assert out_big.shape == (big_batch, action_dim)
    assert jnp.allclose(out_big, ref_big, atol=1e-4, rtol=1e-4)

    # Optional bf16 data path (halves DMA bytes, native v6e/v7x MXU datapath);
    # f32 accumulation + f32 epilogues, so numerics shift only slightly.
    prepped_bf16 = prepare_qnet_params(raw_params, compute_dtype=jnp.bfloat16)
    fwd_bf16 = jax.jit(lambda xx: qnet_forward(xx, prepped_bf16))
    out_bf16 = jax.block_until_ready(fwd_bf16(x_big))
    assert out_bf16.shape == (big_batch, action_dim)
    assert jnp.allclose(out_bf16, ref_big, atol=5e-2, rtol=5e-2)

    print("KERNEL_OK")
</pallas_src>

<mosaic_0001>
module attributes {stable_mosaic.version = 11 : i64} {
  func.func @qnet_kernel(%arg0: i32, %arg1: memref<8x4xf32, #tpu.memory_space<vmem>>, %arg2: memref<4x128xf32, #tpu.memory_space<vmem>>, %arg3: memref<1x128xf32, #tpu.memory_space<vmem>>, %arg4: memref<128x128xf32, #tpu.memory_space<vmem>>, %arg5: memref<1x128xf32, #tpu.memory_space<vmem>>, %arg6: memref<128x8xf32, #tpu.memory_space<vmem>>, %arg7: memref<1x8xf32, #tpu.memory_space<vmem>>, %arg8: memref<8x8xf32, #tpu.memory_space<vmem>>) attributes {dimension_semantics = [#tpu.dimension_semantics<parallel>], iteration_bounds = array<i64: 1>, scalar_prefetch = 0 : i64, scratch_operands = 0 : i64, tpu.core_type = #tpu.core_type<tc>, window_params = [{transform_indices = @transform_0, window_bounds = array<i64: 8, 4>}, {pipeline_mode = #tpu.pipeline_mode<synchronous>, transform_indices = @transform_1, window_bounds = array<i64: 4, 128>}, {pipeline_mode = #tpu.pipeline_mode<synchronous>, transform_indices = @transform_2, window_bounds = array<i64: 1, 128>}, {pipeline_mode = #tpu.pipeline_mode<synchronous>, transform_indices = @transform_3, window_bounds = array<i64: 128, 128>}, {pipeline_mode = #tpu.pipeline_mode<synchronous>, transform_indices = @transform_4, window_bounds = array<i64: 1, 128>}, {pipeline_mode = #tpu.pipeline_mode<synchronous>, transform_indices = @transform_5, window_bounds = array<i64: 128, 8>}, {pipeline_mode = #tpu.pipeline_mode<synchronous>, transform_indices = @transform_6, window_bounds = array<i64: 1, 8>}, {transform_indices = @transform_7, window_bounds = array<i64: 8, 8>}]} {
    %c0 = arith.constant 0 : index
    %c0_0 = arith.constant 0 : index
    %0 = vector.load %arg1[%c0, %c0_0] : memref<8x4xf32, #tpu.memory_space<vmem>>, vector<8x4xf32>
    %c0_1 = arith.constant 0 : index
    %c0_2 = arith.constant 0 : index
    %1 = vector.load %arg2[%c0_1, %c0_2] : memref<4x128xf32, #tpu.memory_space<vmem>>, vector<4x128xf32>
    %cst = arith.constant dense<0.000000e+00> : vector<8x128xf32>
    %2 = tpu.matmul %0, %1, %cst {dimension_numbers = #tpu.dot_dimension_numbers<[1], [0], [0], [1], [0, 0, 1, 1], [], []>} : vector<8x4xf32>, vector<4x128xf32>, vector<8x128xf32> -> vector<8x128xf32>
    %c0_3 = arith.constant 0 : index
    %c0_4 = arith.constant 0 : index
    %3 = vector.load %arg3[%c0_3, %c0_4] : memref<1x128xf32, #tpu.memory_space<vmem>>, vector<1x128xf32>
    %4 = vector.broadcast %3 : vector<1x128xf32> to vector<8x128xf32>
    %5 = arith.addf %2, %4 : vector<8x128xf32>
    %cst_5 = arith.constant 0.000000e+00 : f32
    %6 = vector.broadcast %cst_5 : f32 to vector<8x128xf32>
    %7 = arith.maximumf %5, %6 : vector<8x128xf32>
    %c0_6 = arith.constant 0 : index
    %c0_7 = arith.constant 0 : index
    %8 = vector.load %arg4[%c0_6, %c0_7] : memref<128x128xf32, #tpu.memory_space<vmem>>, vector<128x128xf32>
    %cst_8 = arith.constant dense<0.000000e+00> : vector<8x128xf32>
    %9 = tpu.matmul %7, %8, %cst_8 {dimension_numbers = #tpu.dot_dimension_numbers<[1], [0], [0], [1], [0, 0, 1, 1], [], []>} : vector<8x128xf32>, vector<128x128xf32>, vector<8x128xf32> -> vector<8x128xf32>
    %c0_9 = arith.constant 0 : index
    %c0_10 = arith.constant 0 : index
    %10 = vector.load %arg5[%c0_9, %c0_10] : memref<1x128xf32, #tpu.memory_space<vmem>>, vector<1x128xf32>
    %11 = vector.broadcast %10 : vector<1x128xf32> to vector<8x128xf32>
    %12 = arith.addf %9, %11 : vector<8x128xf32>
    %cst_11 = arith.constant 0.000000e+00 : f32
    %13 = vector.broadcast %cst_11 : f32 to vector<8x128xf32>
    %14 = arith.maximumf %12, %13 : vector<8x128xf32>
    %c0_12 = arith.constant 0 : index
    %c0_13 = arith.constant 0 : index
    %15 = vector.load %arg6[%c0_12, %c0_13] : memref<128x8xf32, #tpu.memory_space<vmem>>, vector<128x8xf32>
    %cst_14 = arith.constant dense<0.000000e+00> : vector<8x8xf32>
    %16 = tpu.matmul %14, %15, %cst_14 {dimension_numbers = #tpu.dot_dimension_numbers<[1], [0], [0], [1], [0, 0, 1, 1], [], []>} : vector<8x128xf32>, vector<128x8xf32>, vector<8x8xf32> -> vector<8x8xf32>
    %c0_15 = arith.constant 0 : index
    %c0_16 = arith.constant 0 : index
    %17 = vector.load %arg7[%c0_15, %c0_16] : memref<1x8xf32, #tpu.memory_space<vmem>>, vector<1x8xf32>
    %18 = vector.broadcast %17 : vector<1x8xf32> to vector<8x8xf32>
    %19 = arith.addf %16, %18 : vector<8x8xf32>
    %c0_17 = arith.constant 0 : index
    %c0_18 = arith.constant 0 : index
    %20 = vector.load %arg8[%c0_17, %c0_18] : memref<8x8xf32, #tpu.memory_space<vmem>>, vector<8x8xf32>
    tpu.vector_store %arg8[%c0_17, %c0_18], %19 {strides = array<i32>} : memref<8x8xf32, #tpu.memory_space<vmem>>, vector<8x8xf32>,
    return
  }
  func.func @transform_0(%arg0: i32) -> (i32, i32) {
    %c0_i32 = arith.constant 0 : i32
    %c0_i32_0 = arith.constant 0 : i32
    return %arg0, %c0_i32 : i32, i32
  }
  func.func @transform_1(%arg0: i32) -> (i32, i32) {
    %c0_i32 = arith.constant 0 : i32
    %c0_i32_0 = arith.constant 0 : i32
    %c0_i32_1 = arith.constant 0 : i32
    return %c0_i32, %c0_i32_0 : i32, i32
  }
  func.func @transform_2(%arg0: i32) -> (i32, i32) {
    %c0_i32 = arith.constant 0 : i32
    %c0_i32_0 = arith.constant 0 : i32
    %c0_i32_1 = arith.constant 0 : i32
    return %c0_i32, %c0_i32_0 : i32, i32
  }
  func.func @transform_3(%arg0: i32) -> (i32, i32) {
    %c0_i32 = arith.constant 0 : i32
    %c0_i32_0 = arith.constant 0 : i32
    %c0_i32_1 = arith.constant 0 : i32
    return %c0_i32, %c0_i32_0 : i32, i32
  }
  func.func @transform_4(%arg0: i32) -> (i32, i32) {
    %c0_i32 = arith.constant 0 : i32
    %c0_i32_0 = arith.constant 0 : i32
    %c0_i32_1 = arith.constant 0 : i32
    return %c0_i32, %c0_i32_0 : i32, i32
  }
  func.func @transform_5(%arg0: i32) -> (i32, i32) {
    %c0_i32 = arith.constant 0 : i32
    %c0_i32_0 = arith.constant 0 : i32
    %c0_i32_1 = arith.constant 0 : i32
    return %c0_i32, %c0_i32_0 : i32, i32
  }
  func.func @transform_6(%arg0: i32) -> (i32, i32) {
    %c0_i32 = arith.constant 0 : i32
    %c0_i32_0 = arith.constant 0 : i32
    %c0_i32_1 = arith.constant 0 : i32
    return %c0_i32, %c0_i32_0 : i32, i32
  }
  func.func @transform_7(%arg0: i32) -> (i32, i32) {
    %c0_i32 = arith.constant 0 : i32
    %c0_i32_0 = arith.constant 0 : i32
    return %arg0, %c0_i32 : i32, i32
  }
}

</mosaic_0001>

<bundles_post_ra>
// kernel: _lambda_.1
= control target key start
LH: loop header
LB: loop body
LE: loop exit
PB: predicated region body
PF: predicated region fallthrough
CT: control target
= control target key end

     0   :  { %12 = vsyncpa [#allocation3], 0  ;;  %s664_s0 = inlined_call_operand.vmem [shape: f32[8,4], index: 0, kind: input, shape index: {}]   ;;  %s665_s1 = inlined_call_operand.vmem [shape: f32[4,128], index: 1, kind: input, shape index: {}]   ;;  %s666_s2 = inlined_call_operand.vmem [shape: f32[1,128], index: 2, kind: input, shape index: {}]   ;;  %s667_s3 = inlined_call_operand.hbm [shape: f32[128,128], index: 3, kind: input, shape index: {}]   ;;  %s668_s4 = inlined_call_operand.vmem [shape: f32[1,128], index: 4, kind: input, shape index: {}]   ;;  %s669_s5 = inlined_call_operand.hbm [shape: f32[128,8], index: 5, kind: input, shape index: {}]   ;;  %s670_s6 = inlined_call_operand.vmem [shape: f32[1,8], index: 6, kind: input, shape index: {}]   ;;  %s671_s7 = inlined_call_operand.vmem [shape: f32[8,8], index: 7, kind: output, shape index: {}]  }
   0x1   :  { %13 = vsyncpa [#allocation5], 0  ;;  %s556_s24 = smov [#allocation2]   ;;  %s508_s28 = scalar_lea.hbm %s667_s3, 2048 }
   0x2   :  { %s25_s25 = sshll.u32 %s556_s24, 4  ;;  %p509_p0 = scmp.ne.s32.totalorder %s667_s3, %s508_s28  ;;  %s26_s25 = int_to_ptr.vmem [resolvable:$true] %s25_s25 }
   0x3   :  { %p512_p1 = scmp.lt.u32.totalorder %s508_s28, %s667_s3 }
   0x5   :  { %p514_p2 = pnand %p512_p1, %p509_p0 }
   0x7   :  { %517 = shalt.err (!%p514_p2)
}
   0x8   :  { %s518_s10 = scalar_lea.vmem %s26_s25, 2048  ;;  %p523_p4 = scmp.lt.s32.totalorder %s26_s25, %s26_s25 }
   0x9   :  { %p519_p3 = scmp.ne.s32.totalorder %s26_s25, %s518_s10  ;;  %p524_p5 = scmp.lt.s32.totalorder %s518_s10, %s518_s10 }
   0xb   :  { %p525_p6 = por %p524_p5, %p523_p4 }
   0xd   :  { %p526_p7 = pnand %p525_p6, %p519_p3 }
   0xf   :  { %529 = shalt.err (!%p526_p7)
}
  0x10   :  { %s557_s11 = smov 128   ;;  %s558_s12 = smov 8  }
  0x11   :  { %31 = dma.hbm_to_vmem [thread:$0]  %s667_s3, 2048, %s26_s25, [#allocation3], %s557_s11, %s557_s11, %s558_s12  }
  0x12   :  { %s559_s15 = smov [#allocation4]   ;;  %s530_s19 = scalar_lea.hbm %s669_s5, 2048 }
  0x13   :  { %s39_s16 = sshll.u32 %s559_s15, 4  ;;  %p531_p8 = scmp.ne.s32.totalorder %s669_s5, %s530_s19  ;;  %s40_s16 = int_to_ptr.vmem [resolvable:$true] %s39_s16 }
  0x14   :  { %p534_p9 = scmp.lt.u32.totalorder %s530_s19, %s669_s5 }
  0x16   :  { %p536_p10 = pnand %p534_p9, %p531_p8 }
  0x18   :  { %539 = shalt.err (!%p536_p10)
}
  0x19   :  { %s540_s24 = scalar_lea.vmem %s40_s16, 2048  ;;  %p545_p12 = scmp.lt.s32.totalorder %s40_s16, %s40_s16 }
  0x1a   :  { %p541_p11 = scmp.ne.s32.totalorder %s40_s16, %s540_s24  ;;  %p546_p13 = scmp.lt.s32.totalorder %s540_s24, %s540_s24 }
  0x1c   :  { %p547_p0 = por %p546_p13, %p545_p12 }
  0x1e   :  { %p548_p1 = pnand %p547_p0, %p541_p11 }
  0x20   :  { %551 = shalt.err (!%p548_p1)
}
  0x21   :  { %45 = dma.hbm_to_vmem [thread:$0]  %s669_s5, 2048, %s40_s16, [#allocation5], %s557_s11, %s557_s11, %s558_s12  }
  0x22   :  { %552 = dma.done.wait [#allocation3], 2048  }
  0x23   :  { %553 = vsyncadd [#allocation3], 4294965248 }
  0x24   :  { %554 = dma.done.wait [#allocation5], 2048  }
  0x25   :  { %555 = vsyncadd [#allocation5], 4294965248  ;;  %v560_v0 = vmov 0.0   ;;  %vm561_vm0 = vmmov 0   ;;  %v562_v1 = vmov 0.0|0.0   ;;  %vm67_vm1 = vcmask 1043456  }
  0x26   :  { %378 = vmatprep.subr.mxu0 %v560_v0  ;;  %380 = vmatprep.mubr.msk.f32.mxu0 %vm561_vm0, %v560_v0  ;;  %vm63_vm2 = vcmask 31744   ;;  %v55_v2 = vld [vmem:[%s665_s1] sm:$0xf]  ;;  %v143_v5 = vld [vmem:[#allocation2 + $0x8] sm:$0xff]  ;;  %v144_v6 = vld [vmem:[#allocation2 + $0x10] sm:$0xff]  ;;  %vm329_vm3 = vcmask 64512  }
  0x27   :  { %453 = vmatprep.subr.bf16.mxu1 %v562_v1  ;;  %415 = vmatprep.mubr.msk.f32.mxu1 %vm561_vm0, %v560_v0  ;;  %v54_v3 = vld [vmem:[%s664_s0] sm:$0xff]  ;;  %v145_v7 = vld [vmem:[#allocation2 + $0x18] sm:$0xff]  ;;  %v147_v11 = vld [vmem:[#allocation2 + $0x28] sm:$0xff] }
  0x28   :  { %v142_v4 = vld [vmem:[#allocation2] sm:$0xff]  ;;  %379 = vmatpush3.msk.msra.mxu0 %vm67_vm1, %v55_v2  ;;  %v457_v9 = vpack.c.bf16 %v145_v7, %v144_v6  ;;  %v148_v13 = vld [vmem:[#allocation2 + $0x30] sm:$0xff]  ;;  %v149_v14 = vld [vmem:[#allocation2 + $0x38] sm:$0xff] }
  0x29   :  { %381 = vmatmul.mubr.msk.f32.vlgmr.msra.gmra.mrb[0].mxu0 %vm63_vm2, %v54_v3  ;;  %v454_v8 = vpack.c.bf16 %v143_v5, %v142_v4  ;;  %477 = vmatprep.subr.bf16.mxu0 %v562_v1  ;;  %v146_v10 = vld [vmem:[#allocation2 + $0x20] sm:$0xff]  ;;  %v463_v15 = vpack.c.bf16 %v149_v14, %v148_v13  ;;  %v151_v17 = vld [vmem:[#allocation2 + $0x48] sm:$0xff]  ;;  %v152_v19 = vld [vmem:[#allocation2 + $0x50] sm:$0xff] }
  0x2a   :  { %450 = vmatprep.mubr.msk.f32.mxu0 %vm561_vm0, %v560_v0  ;;  %v460_v12 = vpack.c.bf16 %v147_v11, %v146_v10  ;;  %v150_v16 = vld [vmem:[#allocation2 + $0x40] sm:$0xff]  ;;  %v153_v20 = vld [vmem:[#allocation2 + $0x58] sm:$0xff]  ;;  %v155_v23 = vld [vmem:[#allocation2 + $0x68] sm:$0xff] }
  0x2b   :  { %455 = vmatpush3.bf16.msra.mxu1 %v454_v8  ;;  %v466_v18 = vpack.c.bf16 %v151_v17, %v150_v16  ;;  %v469_v21 = vpack.c.bf16 %v153_v20, %v152_v19  ;;  %v154_v22 = vld [vmem:[#allocation2 + $0x60] sm:$0xff]  ;;  %v156_v25 = vld [vmem:[#allocation2 + $0x70] sm:$0xff]  ;;  %v157_v26 = vld [vmem:[#allocation2 + $0x78] sm:$0xff] }
  0x2c   :  { %456 = vmatprep.subr.bf16.mxu1 %v562_v1  ;;  %v472_v24 = vpack.c.bf16 %v155_v23, %v154_v22  ;;  %v475_v27 = vpack.c.bf16 %v157_v26, %v156_v25  ;;  %v236_v28 = vld [vmem:[#allocation4] sm:$0xff]  ;;  %v237_v29 = vld [vmem:[#allocation4 + $0x8] sm:$0xff]  ;;  %v238_v30 = vld [vmem:[#allocation4 + $0x10] sm:$0xff] }
  0x2d   :  { %v478_v31 = vpack.c.bf16 %v237_v29, %v236_v28  ;;  %v239_v32 = vld [vmem:[#allocation4 + $0x18] sm:$0xff]  ;;  %v240_v34 = vld [vmem:[#allocation4 + $0x20] sm:$0xff]  ;;  %v241_v35 = vld [vmem:[#allocation4 + $0x28] sm:$0xff] }
  0x2e   :  { %v481_v33 = vpack.c.bf16 %v239_v32, %v238_v30  ;;  %v484_v36 = vpack.c.bf16 %v241_v35, %v240_v34  ;;  %v242_v37 = vld [vmem:[#allocation4 + $0x30] sm:$0xff]  ;;  %v243_v38 = vld [vmem:[#allocation4 + $0x38] sm:$0xff]  ;;  %v244_v40 = vld [vmem:[#allocation4 + $0x40] sm:$0xff] }
  0x2f   :  { %458 = vmatpush3.bf16.msra.mxu1 %v457_v9  ;;  %479 = vmatpush3.bf16.msra.mxu0 %v478_v31  ;;  %v487_v39 = vpack.c.bf16 %v243_v38, %v242_v37  ;;  %v245_v41 = vld [vmem:[#allocation4 + $0x48] sm:$0xff]  ;;  %v246_v43 = vld [vmem:[#allocation4 + $0x50] sm:$0xff]  ;;  %v247_v44 = vld [vmem:[#allocation4 + $0x58] sm:$0xff] }
  0x30   :  { %459 = vmatprep.subr.bf16.mxu1 %v562_v1  ;;  %480 = vmatprep.subr.bf16.mxu0 %v562_v1  ;;  %v490_v42 = vpack.c.bf16 %v245_v41, %v244_v40  ;;  %v493_v45 = vpack.c.bf16 %v247_v44, %v246_v43  ;;  %v248_v46 = vld [vmem:[#allocation4 + $0x60] sm:$0xff]  ;;  %v249_v47 = vld [vmem:[#allocation4 + $0x68] sm:$0xff]  ;;  %v250_v54 = vld [vmem:[#allocation4 + $0x70] sm:$0xff] }
  0x31   :  { %v496_v48 = vpack.c.bf16 %v249_v47, %v248_v46  ;;  %v337_v49 = vld [vmem:[%s666_s2] ss:$0 sm:$0xff]  ;;  %v251_v55 = vld [vmem:[#allocation4 + $0x78] sm:$0xff] }
  0x32   :  { %v499_v56 = vpack.c.bf16 %v251_v55, %v250_v54  ;;  %v340_v57 = vld [vmem:[%s668_s4] ss:$0 sm:$0xff] }
  0x33   :  { %461 = vmatpush3.bf16.msra.mxu1 %v460_v12  ;;  %482 = vmatpush3.bf16.msra.mxu0 %v481_v33  ;;  %v341_v62 = vld [vmem:[%s670_s6] ss:$0 sm:$0xff] }
  0x34   :  { %462 = vmatprep.subr.bf16.mxu1 %v562_v1  ;;  %483 = vmatprep.subr.bf16.mxu0 %v562_v1 }
  0x37   :  { %464 = vmatpush3.bf16.msra.mxu1 %v463_v15  ;;  %485 = vmatpush3.bf16.msra.mxu0 %v484_v36 }
  0x38   :  { %465 = vmatprep.subr.bf16.mxu1 %v562_v1  ;;  %486 = vmatprep.subr.bf16.mxu0 %v562_v1 }
  0x3b   :  { %467 = vmatpush3.bf16.msra.mxu1 %v466_v18  ;;  %488 = vmatpush3.bf16.msra.mxu0 %v487_v39 }
  0x3c   :  { %468 = vmatprep.subr.bf16.mxu1 %v562_v1  ;;  %489 = vmatprep.subr.bf16.mxu0 %v562_v1 }
  0x3f   :  { %470 = vmatpush3.bf16.msra.mxu1 %v469_v21  ;;  %491 = vmatpush3.bf16.msra.mxu0 %v490_v42 }
  0x40   :  { %471 = vmatprep.subr.bf16.mxu1 %v562_v1  ;;  %492 = vmatprep.subr.bf16.mxu0 %v562_v1 }
  0x43   :  { %473 = vmatpush3.bf16.msra.mxu1 %v472_v24  ;;  %494 = vmatpush3.bf16.msra.mxu0 %v493_v45 }
  0x44   :  { %474 = vmatprep.subr.bf16.mxu1 %v562_v1  ;;  %495 = vmatprep.subr.bf16.mxu0 %v562_v1 }
  0x47   :  { %476 = vmatpush3.bf16.msra.mxu1 %v475_v27  ;;  %497 = vmatpush3.bf16.msra.mxu0 %v496_v48 }
  0x48   :  { %498 = vmatprep.subr.bf16.mxu0 %v562_v1 }
  0x4b   :  { %500 = vmatpush3.bf16.msra.mxu0 %v499_v56 }
  0xfc   :  { %v137_v50 = vpop.f32.mrb[0].mxu0 }
  0xfd   :  { %v138_v51 = vadd.f32 %v337_v49, %v137_v50  ;;  %v382_v52 = vpop.f32.mrb[1].mxu0 }
  0xff   :  { %v141_v53 = vmax.f32 %v138_v51, 0.0 }
 0x101   :  { %416 = vmatmul.mubr.f32.vlgmr.msra.gmra.mrb[0].mxu1 %v141_v53 }
 0x1d4   :  { %v231_v58 = vpop.f32.mrb[0].mxu1 }
 0x1d5   :  { %v232_v59 = vadd.f32 %v340_v57, %v231_v58  ;;  %v417_v60 = vpop.f32.mrb[1].mxu1 }
 0x1d7   :  { %v235_v61 = vmax.f32 %v232_v59, 0.0 }
 0x1d9   :  { %451 = vmatmul.mubr.f32.vlgmr.msra.gmra.mrb[2].mxu0 %v235_v61 }
 0x2ac   :  { %v325_v63 = vpop.f32.mrb[2].mxu0 }
 0x2ad   :  { %v326_v0 = vadd.f32 %v341_v62, %v325_v63  ;;  %v452_v1 = vpop.f32.mrb[3].mxu0 }
 0x2af   :  { %330 = vst.msk [vmem:[%s671_s7] sm:$0xff] %vm329_vm3, %v326_v0 }
 0x2b0   :  { %335 = vsyncpa [#allocation3], 1 }
 0x2b1   :  { %336 = vsyncpa [#allocation5], 1 }

</bundles_post_ra>
